<compile_context>
chip_gen: v6e
topology: v6e:2x2x1
jax: 0.10.0
libtpu: 0.0.40
codegen_flags: <defaults>
</compile_context>

<pallas_src>
import functools
import math

import jax
import jax.numpy as jnp
from jax.experimental import pallas as pl
from jax.experimental.pallas import tpu as pltpu


def _pick_group_heads(num_heads, head_dim, max_group_lanes=128):
    """Largest divisor of num_heads whose lane width (g*head_dim) <= max_group_lanes."""
    max_g = max(1, max_group_lanes // head_dim)
    g = min(num_heads, max_g)
    while num_heads % g:
        g -= 1
    return g


def _pick_vmem_limit_bytes():
    """Generation-aware VMEM budget: ~3/4 of physical VMEM, capped at 100 MiB."""
    cap = None
    try:
        cap = getattr(pltpu.get_tpu_info(), "vmem_capacity_bytes", None)
    except Exception:
        cap = None
    if not cap:
        kind = jax.devices()[0].device_kind.lower()
        cap = 64 * 1024 * 1024 if "v7" in kind else 128 * 1024 * 1024
    return int(min(cap * 3 // 4, 100 * 1024 * 1024))


def _attention_kernel(x_ref, mask_ref, wqkv_ref, bqkv_ref, wo_ref, lnp_ref,
                      *rest, group_heads, head_dim, ln_eps, emit_probs):
    if emit_probs:
        out_ref, probs_ref, y_acc = rest
    else:
        out_ref, y_acc = rest
        probs_ref = None

    g = pl.program_id(1)
    ghd = group_heads * head_dim

    x_f32 = x_ref[0].astype(jnp.float32)                 # (S, H), f32 for residual/LN
    x_bf = x_f32.astype(jnp.bfloat16)                    # bf16 copy for the MXU
    mask = mask_ref[0].astype(jnp.float32)               # (1, S) additive mask row

    # Group-sliced fused QKV projection: one (S,H) @ (H, 3*ghd) bf16 MXU matmul.
    qkv = jnp.dot(x_bf, wqkv_ref[0],
                  preferred_element_type=jnp.float32) + bqkv_ref[0]   # (S, 3*ghd) f32

    scale = 1.0 / math.sqrt(head_dim)
    q = (qkv[:, :ghd] * scale).astype(jnp.bfloat16)      # fold 1/sqrt(d) into q
    k = qkv[:, ghd:2 * ghd].astype(jnp.bfloat16)
    v = qkv[:, 2 * ghd:].astype(jnp.bfloat16)

    ctx_parts = []
    for h in range(group_heads):          # short static unroll (G*head_dim ~ 128 lanes)
        lo = h * head_dim
        qh = q[:, lo:lo + head_dim]
        kh = k[:, lo:lo + head_dim]
        vh = v[:, lo:lo + head_dim]

        # Contract last dims of both operands -> no explicit K transpose.
        scores = jax.lax.dot_general(
            qh, kh, dimension_numbers=(((1,), (1,)), ((), ())),
            preferred_element_type=jnp.float32)           # (S, S) f32
        scores = scores + mask                            # (1,S) broadcast over queries

        # numerically-stable softmax along the key axis
        scores = scores - jnp.max(scores, axis=-1, keepdims=True)
        e = jnp.exp(scores)
        denom = jnp.sum(e, axis=-1, keepdims=True)
        probs_bf = (e * pl.reciprocal(denom, approx=True)).astype(jnp.bfloat16)

        if emit_probs:
            probs_ref[0, h] = probs_bf                    # store the exact bf16 reused below

        ctx_parts.append(jnp.dot(probs_bf, vh,
                                 preferred_element_type=jnp.float32))   # (S, hd)

    ctx_g = ctx_parts[0] if group_heads == 1 else jnp.concatenate(ctx_parts, axis=-1)
    ctx_g = ctx_g.astype(jnp.bfloat16)                    # (S, ghd)

    @pl.when(g == 0)
    def _init():
        y_acc[...] = jnp.zeros_like(y_acc)

    # Output projection accumulated per head-GROUP (K = ghd, 128 at BERT scale),
    # not per head (K = head_dim): one (S,ghd) @ (ghd,H) matmul per grid step.
    y_acc[...] += jnp.dot(ctx_g, wo_ref[0], preferred_element_type=jnp.float32)

    @pl.when(g == pl.num_programs(1) - 1)
    def _finalize():
        # SelfOutput: ReLU(dense(ctx) + bo); dropout = identity (eval); LayerNorm(y + x)
        y = jnp.maximum(y_acc[...] + lnp_ref[0], 0.0)
        z = y + x_f32
        mu = jnp.mean(z, axis=-1, keepdims=True)
        var = jnp.mean((z - mu) ** 2, axis=-1, keepdims=True)
        zn = (z - mu) * jax.lax.rsqrt(var + ln_eps)
        out_ref[0] = (zn * lnp_ref[1] + lnp_ref[2]).astype(out_ref.dtype)


def attention_forward(hidden_states, attention_mask, params, num_heads, *,
                      emit_probs=True, ln_eps=1e-5, max_group_lanes=128):
    """hidden_states: [B,S,H] f32, attention_mask: [B,1,1,S] additive mask."""
    B, S, H = hidden_states.shape
    assert H % num_heads == 0
    head_dim = H // num_heads
    group_heads = _pick_group_heads(num_heads, head_dim, max_group_lanes)
    n_groups = num_heads // group_heads
    ghd = group_heads * head_dim

    def group_cols(w):   # (H, H) -> (n_groups, H, ghd): per-group column slabs
        return w.reshape(H, n_groups, ghd).transpose(1, 0, 2)

    def group_bias(b):   # (1, H) -> (n_groups, 1, ghd)
        return b.reshape(1, n_groups, ghd).transpose(1, 0, 2)

    # Host-side regrouping; weights bf16 (halves DMA, native MXU rate),
    # biases / LN params stay f32.
    wqkv = jnp.concatenate([group_cols(params["wq"]), group_cols(params["wk"]),
                            group_cols(params["wv"])], axis=2).astype(jnp.bfloat16)
    bqkv = jnp.concatenate([group_bias(params["bq"]), group_bias(params["bk"]),
                            group_bias(params["bv"])], axis=2).astype(jnp.float32)
    wo = params["wo"].reshape(n_groups, ghd, H).astype(jnp.bfloat16)     # group row slabs
    lnp = jnp.concatenate([params["bo"], params["gamma"], params["beta"]],
                          axis=0).astype(jnp.float32)                    # (3, H)

    # One additive mask row per batch element; broadcast in-kernel.
    mask_b1s = attention_mask[:, 0, :, :].astype(jnp.float32)            # (B, 1, S)

    kernel = functools.partial(_attention_kernel,
                               group_heads=group_heads, head_dim=head_dim,
                               ln_eps=ln_eps, emit_probs=emit_probs)

    in_specs = [
        pl.BlockSpec((1, S, H), lambda b, g: (b, 0, 0)),         # hidden_states
        pl.BlockSpec((1, 1, S), lambda b, g: (b, 0, 0)),         # additive mask row
        pl.BlockSpec((1, H, 3 * ghd), lambda b, g: (g, 0, 0)),   # Wqkv group slab (bf16)
        pl.BlockSpec((1, 1, 3 * ghd), lambda b, g: (g, 0, 0)),   # bqkv group slab
        pl.BlockSpec((1, ghd, H), lambda b, g: (g, 0, 0)),       # Wo group rows (bf16)
        # TODO(synk): lnp is the only constant-index operand left; single-buffer
        #             it (pipeline_mode=pl.Buffered(1)) if VMEM ever gets tight.
        pl.BlockSpec((3, H), lambda b, g: (0, 0)),               # [bo; gamma; beta]
    ]

    out_shape = [jax.ShapeDtypeStruct((B, S, H), jnp.float32)]
    out_specs = [pl.BlockSpec((1, S, H), lambda b, g: (b, 0, 0))]
    if emit_probs:
        # bf16 probs: halves the dominant HBM write stream at BERT scale.
        out_shape.append(jax.ShapeDtypeStruct((B, num_heads, S, S), jnp.bfloat16))
        out_specs.append(pl.BlockSpec((1, group_heads, S, S),
                                      lambda b, g: (b, g, 0, 0)))

    flops = B * (2 * S * H * 3 * H + 4 * num_heads * S * S * head_dim + 2 * S * H * H)
    bytes_accessed = (hidden_states.size * 4 + B * S * H * 4
                      + (B * num_heads * S * S * 2 if emit_probs else 0)
                      + B * (wqkv.size + wo.size) * 2 + B * bqkv.size * 4
                      + lnp.size * 4 + mask_b1s.size * 4)
    cost = pl.CostEstimate(flops=flops,
                           transcendentals=B * num_heads * S * S,
                           bytes_accessed=bytes_accessed)

    results = pl.pallas_call(
        kernel,
        out_shape=out_shape,
        grid_spec=pltpu.PrefetchScalarGridSpec(
            num_scalar_prefetch=0,
            grid=(B, n_groups),
            in_specs=in_specs,
            out_specs=out_specs,
            scratch_shapes=[pltpu.VMEM((S, H), jnp.float32)]),   # output-proj accumulator
        compiler_params=pltpu.CompilerParams(
            dimension_semantics=("parallel", "arbitrary"),
            vmem_limit_bytes=_pick_vmem_limit_bytes()),
        cost_estimate=cost,
    )(hidden_states, mask_b1s, wqkv, bqkv, wo, lnp)

    if emit_probs:
        out, probs = results
        return out, probs
    (out,) = results
    return out


def reference_forward(x, attention_mask, params, num_heads):
    """Pure-JAX f32 reference matching the PyTorch module semantics."""
    B, S, H = x.shape
    hd = H // num_heads

    def lin(v, w, b):
        return v @ w + b[0]

    q = lin(x, params["wq"], params["bq"])
    k = lin(x, params["wk"], params["bk"])
    v = lin(x, params["wv"], params["bv"])

    def split_heads(t):
        return t.reshape(B, S, num_heads, hd).transpose(0, 2, 1, 3)

    qh, kh, vh = split_heads(q), split_heads(k), split_heads(v)
    scores = jnp.einsum("bhqd,bhkd->bhqk", qh, kh) / math.sqrt(hd)
    scores = scores + attention_mask                      # [B,1,1,S] broadcast
    probs = jax.nn.softmax(scores, axis=-1)
    ctx = jnp.einsum("bhqk,bhkd->bhqd", probs, vh)
    ctx = ctx.transpose(0, 2, 1, 3).reshape(B, S, H)

    y = jax.nn.relu(lin(ctx, params["wo"], params["bo"]))
    z = y + x
    mu = jnp.mean(z, axis=-1, keepdims=True)
    var = jnp.mean((z - mu) ** 2, axis=-1, keepdims=True)
    out = (z - mu) / jnp.sqrt(var + 1e-5) * params["gamma"][0] + params["beta"][0]
    return out, probs


def make_params(key, hidden_size):
    ks = jax.random.split(key, 10)
    H = hidden_size
    init = lambda k: (0.02 * jax.random.normal(k, (H, H))).astype(jnp.float32)
    binit = lambda k: (0.02 * jax.random.normal(k, (1, H))).astype(jnp.float32)
    return {
        "wq": init(ks[0]), "wk": init(ks[1]), "wv": init(ks[2]), "wo": init(ks[3]),
        "bq": binit(ks[4]), "bk": binit(ks[5]), "bv": binit(ks[6]), "bo": binit(ks[7]),
        "gamma": (1.0 + 0.1 * jax.random.normal(ks[8], (1, H))).astype(jnp.float32),
        "beta": (0.1 * jax.random.normal(ks[9], (1, H))).astype(jnp.float32),
    }


if __name__ == "__main__":
    B, S, H, NUM_HEADS = 2, 8, 32, 4

    key = jax.random.PRNGKey(0)
    k_x, k_m, k_p = jax.random.split(key, 3)

    hidden_states = jax.random.normal(k_x, (B, S, H), dtype=jnp.float32)
    # BERT-style additive mask: 0 for attended keys, -1e4 for masked keys.
    keep = jax.random.uniform(k_m, (B, 1, 1, S)) > 0.2
    attention_mask = jnp.where(keep, 0.0, -1e4).astype(jnp.float32)

    params = make_params(k_p, H)

    # Default group size (head_dim=8 -> all 4 heads fit one 128-lane group, grid=(B,1)).
    out, probs = attention_forward(hidden_states, attention_mask, params, NUM_HEADS,
                                   emit_probs=True)
    out = jax.block_until_ready(out)
    probs = jax.block_until_ready(probs)

    # Probs-free path (biggest HBM saving at scale) — just exercise it.
    out_noprobs = attention_forward(hidden_states, attention_mask, params, NUM_HEADS,
                                    emit_probs=False)
    out_noprobs = jax.block_until_ready(out_noprobs)

    # Force a multi-group grid (2 heads / group -> grid=(B, 2)) to exercise the
    # head-group axis + accumulated output-projection path used at BERT scale.
    out_grp, probs_grp = attention_forward(
        hidden_states, attention_mask, params, NUM_HEADS, emit_probs=True,
        max_group_lanes=2 * (H // NUM_HEADS))
    out_grp = jax.block_until_ready(out_grp)
    probs_grp = jax.block_until_ready(probs_grp)

    ref_out, ref_probs = reference_forward(hidden_states, attention_mask, params, NUM_HEADS)

    assert out.shape == (B, S, H)
    assert probs.shape == (B, NUM_HEADS, S, S)
    # Tolerances loosened vs f32 reference: matmuls run in bf16, probs are
    # emitted in bf16, and the softmax denominator uses the approx EUP reciprocal.
    assert jnp.allclose(out, ref_out, rtol=5e-2, atol=5e-2), "attention_output mismatch"
    assert jnp.allclose(probs.astype(jnp.float32), ref_probs, rtol=5e-2, atol=2e-2), \
        "attention_probs mismatch"
    assert jnp.allclose(out_noprobs, out, rtol=1e-6, atol=1e-6), "emit_probs paths disagree"
    assert jnp.allclose(out_grp, ref_out, rtol=5e-2, atol=5e-2), "grouped output mismatch"
    assert jnp.allclose(probs_grp.astype(jnp.float32), ref_probs, rtol=5e-2, atol=2e-2), \
        "grouped probs mismatch"

    print("KERNEL_OK")
</pallas_src>

<mosaic_0001>
module attributes {stable_mosaic.version = 11 : i64} {
  func.func @_attention_kernel(%arg0: i32, %arg1: i32, %arg2: memref<1x8x32xf32, #tpu.memory_space<vmem>>, %arg3: memref<1x1x8xf32, #tpu.memory_space<vmem>>, %arg4: memref<1x32x96xbf16, #tpu.memory_space<vmem>>, %arg5: memref<1x1x96xf32, #tpu.memory_space<vmem>>, %arg6: memref<1x32x32xbf16, #tpu.memory_space<vmem>>, %arg7: memref<3x32xf32, #tpu.memory_space<vmem>>, %arg8: memref<1x8x32xf32, #tpu.memory_space<vmem>>, %arg9: memref<1x4x8x8xbf16, #tpu.memory_space<vmem>>, %arg10: memref<8x32xf32, #tpu.memory_space<vmem>>) attributes {dimension_semantics = [#tpu.dimension_semantics<parallel>, #tpu.dimension_semantics<arbitrary>], iteration_bounds = array<i64: 2, 1>, scalar_prefetch = 0 : i64, scratch_operands = 1 : i64, tpu.core_type = #tpu.core_type<tc>, window_params = [{transform_indices = @transform_0, window_bounds = array<i64: 1, 8, 32>}, {transform_indices = @transform_1, window_bounds = array<i64: 1, 1, 8>}, {transform_indices = @transform_2, window_bounds = array<i64: 1, 32, 96>}, {transform_indices = @transform_3, window_bounds = array<i64: 1, 1, 96>}, {transform_indices = @transform_4, window_bounds = array<i64: 1, 32, 32>}, {pipeline_mode = #tpu.pipeline_mode<synchronous>, transform_indices = @transform_5, window_bounds = array<i64: 3, 32>}, {transform_indices = @transform_6, window_bounds = array<i64: 1, 8, 32>}, {transform_indices = @transform_7, window_bounds = array<i64: 1, 4, 8, 8>}]} {
    %c0 = arith.constant 0 : index
    %c0_0 = arith.constant 0 : index
    %c0_1 = arith.constant 0 : index
    %0 = vector.load %arg2[%c0, %c0_0, %c0_1] : memref<1x8x32xf32, #tpu.memory_space<vmem>>, vector<1x8x32xf32>
    %1 = vector.shape_cast %0 : vector<1x8x32xf32> to vector<8x32xf32>
    %2 = arith.truncf %1 : vector<8x32xf32> to vector<8x32xbf16>
    %c0_2 = arith.constant 0 : index
    %c0_3 = arith.constant 0 : index
    %c0_4 = arith.constant 0 : index
    %3 = vector.load %arg3[%c0_2, %c0_3, %c0_4] : memref<1x1x8xf32, #tpu.memory_space<vmem>>, vector<1x1x8xf32>
    %4 = vector.shape_cast %3 : vector<1x1x8xf32> to vector<1x8xf32>
    %c0_5 = arith.constant 0 : index
    %c0_6 = arith.constant 0 : index
    %c0_7 = arith.constant 0 : index
    %5 = vector.load %arg4[%c0_5, %c0_6, %c0_7] : memref<1x32x96xbf16, #tpu.memory_space<vmem>>, vector<1x32x96xbf16>
    %6 = vector.shape_cast %5 : vector<1x32x96xbf16> to vector<32x96xbf16>
    %cst = arith.constant dense<0.000000e+00> : vector<8x96xf32>
    %7 = tpu.matmul %2, %6, %cst {dimension_numbers = #tpu.dot_dimension_numbers<[1], [0], [0], [1], [0, 0, 1, 1], [], []>} : vector<8x32xbf16>, vector<32x96xbf16>, vector<8x96xf32> -> vector<8x96xf32>
    %c0_8 = arith.constant 0 : index
    %c0_9 = arith.constant 0 : index
    %c0_10 = arith.constant 0 : index
    %8 = vector.load %arg5[%c0_8, %c0_9, %c0_10] : memref<1x1x96xf32, #tpu.memory_space<vmem>>, vector<1x1x96xf32>
    %9 = vector.shape_cast %8 : vector<1x1x96xf32> to vector<1x96xf32>
    %10 = vector.broadcast %9 : vector<1x96xf32> to vector<8x96xf32>
    %11 = arith.addf %7, %10 : vector<8x96xf32>
    %12 = vector.extract_strided_slice %11 {offsets = [0, 0], sizes = [8, 32], strides = [1, 1]} : vector<8x96xf32> to vector<8x32xf32>
    %cst_11 = arith.constant 0.353553385 : f32
    %13 = vector.broadcast %cst_11 : f32 to vector<8x32xf32>
    %14 = arith.mulf %12, %13 : vector<8x32xf32>
    %15 = arith.truncf %14 : vector<8x32xf32> to vector<8x32xbf16>
    %16 = vector.extract_strided_slice %11 {offsets = [0, 32], sizes = [8, 32], strides = [1, 1]} : vector<8x96xf32> to vector<8x32xf32>
    %17 = arith.truncf %16 : vector<8x32xf32> to vector<8x32xbf16>
    %18 = vector.extract_strided_slice %11 {offsets = [0, 64], sizes = [8, 32], strides = [1, 1]} : vector<8x96xf32> to vector<8x32xf32>
    %19 = arith.truncf %18 : vector<8x32xf32> to vector<8x32xbf16>
    %20 = vector.extract_strided_slice %15 {offsets = [0, 0], sizes = [8, 8], strides = [1, 1]} : vector<8x32xbf16> to vector<8x8xbf16>
    %21 = vector.extract_strided_slice %17 {offsets = [0, 0], sizes = [8, 8], strides = [1, 1]} : vector<8x32xbf16> to vector<8x8xbf16>
    %22 = vector.extract_strided_slice %19 {offsets = [0, 0], sizes = [8, 8], strides = [1, 1]} : vector<8x32xbf16> to vector<8x8xbf16>
    %cst_12 = arith.constant dense<0.000000e+00> : vector<8x8xf32>
    %23 = tpu.matmul %20, %21, %cst_12 {dimension_numbers = #tpu.dot_dimension_numbers<[1], [1], [0], [0], [0, 0, 1, 0], [], []>} : vector<8x8xbf16>, vector<8x8xbf16>, vector<8x8xf32> -> vector<8x8xf32>
    %24 = vector.broadcast %4 : vector<1x8xf32> to vector<8x8xf32>
    %25 = arith.addf %23, %24 : vector<8x8xf32>
    %cst_13 = arith.constant dense<0xFF800000> : vector<8xf32>
    %26 = vector.multi_reduction <maximumf>, %25, %cst_13 [1] : vector<8x8xf32> to vector<8xf32>
    %27 = vector.shape_cast %26 : vector<8xf32> to vector<8x1xf32>
    %28 = vector.broadcast %27 : vector<8x1xf32> to vector<8x8xf32>
    %29 = arith.subf %25, %28 : vector<8x8xf32>
    %30 = math.exp %29 : vector<8x8xf32>
    %cst_14 = arith.constant dense<0.000000e+00> : vector<8xf32>
    %31 = vector.multi_reduction <add>, %30, %cst_14 [1] : vector<8x8xf32> to vector<8xf32>
    %32 = vector.shape_cast %31 : vector<8xf32> to vector<8x1xf32>
    %33 = tpu.reciprocal %32 {approx = true} : vector<8x1xf32> -> vector<8x1xf32>
    %34 = vector.broadcast %33 : vector<8x1xf32> to vector<8x8xf32>
    %35 = arith.mulf %30, %34 : vector<8x8xf32>
    %36 = arith.truncf %35 : vector<8x8xf32> to vector<8x8xbf16>
    %c0_15 = arith.constant 0 : index
    %c0_16 = arith.constant 0 : index
    %c0_17 = arith.constant 0 : index
    %c0_18 = arith.constant 0 : index
    %37 = vector.load %arg9[%c0_15, %c0_16, %c0_17, %c0_18] : memref<1x4x8x8xbf16, #tpu.memory_space<vmem>>, vector<1x1x8x8xbf16>
    %38 = vector.shape_cast %37 : vector<1x1x8x8xbf16> to vector<8x8xbf16>
    %39 = vector.shape_cast %36 : vector<8x8xbf16> to vector<1x1x8x8xbf16>
    tpu.vector_store %arg9[%c0_15, %c0_16, %c0_17, %c0_18], %39 {strides = array<i32>} : memref<1x4x8x8xbf16, #tpu.memory_space<vmem>>, vector<1x1x8x8xbf16>,
    %cst_19 = arith.constant dense<0.000000e+00> : vector<8x8xf32>
    %40 = tpu.matmul %36, %22, %cst_19 {dimension_numbers = #tpu.dot_dimension_numbers<[1], [0], [0], [1], [0, 0, 1, 1], [], []>} : vector<8x8xbf16>, vector<8x8xbf16>, vector<8x8xf32> -> vector<8x8xf32>
    %41 = vector.extract_strided_slice %15 {offsets = [0, 8], sizes = [8, 8], strides = [1, 1]} : vector<8x32xbf16> to vector<8x8xbf16>
    %42 = vector.extract_strided_slice %17 {offsets = [0, 8], sizes = [8, 8], strides = [1, 1]} : vector<8x32xbf16> to vector<8x8xbf16>
    %43 = vector.extract_strided_slice %19 {offsets = [0, 8], sizes = [8, 8], strides = [1, 1]} : vector<8x32xbf16> to vector<8x8xbf16>
    %cst_20 = arith.constant dense<0.000000e+00> : vector<8x8xf32>
    %44 = tpu.matmul %41, %42, %cst_20 {dimension_numbers = #tpu.dot_dimension_numbers<[1], [1], [0], [0], [0, 0, 1, 0], [], []>} : vector<8x8xbf16>, vector<8x8xbf16>, vector<8x8xf32> -> vector<8x8xf32>
    %45 = vector.broadcast %4 : vector<1x8xf32> to vector<8x8xf32>
    %46 = arith.addf %44, %45 : vector<8x8xf32>
    %cst_21 = arith.constant dense<0xFF800000> : vector<8xf32>
    %47 = vector.multi_reduction <maximumf>, %46, %cst_21 [1] : vector<8x8xf32> to vector<8xf32>
    %48 = vector.shape_cast %47 : vector<8xf32> to vector<8x1xf32>
    %49 = vector.broadcast %48 : vector<8x1xf32> to vector<8x8xf32>
    %50 = arith.subf %46, %49 : vector<8x8xf32>
    %51 = math.exp %50 : vector<8x8xf32>
    %cst_22 = arith.constant dense<0.000000e+00> : vector<8xf32>
    %52 = vector.multi_reduction <add>, %51, %cst_22 [1] : vector<8x8xf32> to vector<8xf32>
    %53 = vector.shape_cast %52 : vector<8xf32> to vector<8x1xf32>
    %54 = tpu.reciprocal %53 {approx = true} : vector<8x1xf32> -> vector<8x1xf32>
    %55 = vector.broadcast %54 : vector<8x1xf32> to vector<8x8xf32>
    %56 = arith.mulf %51, %55 : vector<8x8xf32>
    %57 = arith.truncf %56 : vector<8x8xf32> to vector<8x8xbf16>
    %c0_23 = arith.constant 0 : index
    %c1 = arith.constant 1 : index
    %c0_24 = arith.constant 0 : index
    %c0_25 = arith.constant 0 : index
    %58 = vector.load %arg9[%c0_23, %c1, %c0_24, %c0_25] : memref<1x4x8x8xbf16, #tpu.memory_space<vmem>>, vector<1x1x8x8xbf16>
    %59 = vector.shape_cast %58 : vector<1x1x8x8xbf16> to vector<8x8xbf16>
    %60 = vector.shape_cast %57 : vector<8x8xbf16> to vector<1x1x8x8xbf16>
    tpu.vector_store %arg9[%c0_23, %c1, %c0_24, %c0_25], %60 {strides = array<i32>} : memref<1x4x8x8xbf16, #tpu.memory_space<vmem>>, vector<1x1x8x8xbf16>,
    %cst_26 = arith.constant dense<0.000000e+00> : vector<8x8xf32>
    %61 = tpu.matmul %57, %43, %cst_26 {dimension_numbers = #tpu.dot_dimension_numbers<[1], [0], [0], [1], [0, 0, 1, 1], [], []>} : vector<8x8xbf16>, vector<8x8xbf16>, vector<8x8xf32> -> vector<8x8xf32>
    %62 = vector.extract_strided_slice %15 {offsets = [0, 16], sizes = [8, 8], strides = [1, 1]} : vector<8x32xbf16> to vector<8x8xbf16>
    %63 = vector.extract_strided_slice %17 {offsets = [0, 16], sizes = [8, 8], strides = [1, 1]} : vector<8x32xbf16> to vector<8x8xbf16>
    %64 = vector.extract_strided_slice %19 {offsets = [0, 16], sizes = [8, 8], strides = [1, 1]} : vector<8x32xbf16> to vector<8x8xbf16>
    %cst_27 = arith.constant dense<0.000000e+00> : vector<8x8xf32>
    %65 = tpu.matmul %62, %63, %cst_27 {dimension_numbers = #tpu.dot_dimension_numbers<[1], [1], [0], [0], [0, 0, 1, 0], [], []>} : vector<8x8xbf16>, vector<8x8xbf16>, vector<8x8xf32> -> vector<8x8xf32>
    %66 = vector.broadcast %4 : vector<1x8xf32> to vector<8x8xf32>
    %67 = arith.addf %65, %66 : vector<8x8xf32>
    %cst_28 = arith.constant dense<0xFF800000> : vector<8xf32>
    %68 = vector.multi_reduction <maximumf>, %67, %cst_28 [1] : vector<8x8xf32> to vector<8xf32>
    %69 = vector.shape_cast %68 : vector<8xf32> to vector<8x1xf32>
    %70 = vector.broadcast %69 : vector<8x1xf32> to vector<8x8xf32>
    %71 = arith.subf %67, %70 : vector<8x8xf32>
    %72 = math.exp %71 : vector<8x8xf32>
    %cst_29 = arith.constant dense<0.000000e+00> : vector<8xf32>
    %73 = vector.multi_reduction <add>, %72, %cst_29 [1] : vector<8x8xf32> to vector<8xf32>
    %74 = vector.shape_cast %73 : vector<8xf32> to vector<8x1xf32>
    %75 = tpu.reciprocal %74 {approx = true} : vector<8x1xf32> -> vector<8x1xf32>
    %76 = vector.broadcast %75 : vector<8x1xf32> to vector<8x8xf32>
    %77 = arith.mulf %72, %76 : vector<8x8xf32>
    %78 = arith.truncf %77 : vector<8x8xf32> to vector<8x8xbf16>
    %c0_30 = arith.constant 0 : index
    %c2 = arith.constant 2 : index
    %c0_31 = arith.constant 0 : index
    %c0_32 = arith.constant 0 : index
    %79 = vector.load %arg9[%c0_30, %c2, %c0_31, %c0_32] : memref<1x4x8x8xbf16, #tpu.memory_space<vmem>>, vector<1x1x8x8xbf16>
    %80 = vector.shape_cast %79 : vector<1x1x8x8xbf16> to vector<8x8xbf16>
    %81 = vector.shape_cast %78 : vector<8x8xbf16> to vector<1x1x8x8xbf16>
    tpu.vector_store %arg9[%c0_30, %c2, %c0_31, %c0_32], %81 {strides = array<i32>} : memref<1x4x8x8xbf16, #tpu.memory_space<vmem>>, vector<1x1x8x8xbf16>,
    %cst_33 = arith.constant dense<0.000000e+00> : vector<8x8xf32>
    %82 = tpu.matmul %78, %64, %cst_33 {dimension_numbers = #tpu.dot_dimension_numbers<[1], [0], [0], [1], [0, 0, 1, 1], [], []>} : vector<8x8xbf16>, vector<8x8xbf16>, vector<8x8xf32> -> vector<8x8xf32>
    %83 = vector.extract_strided_slice %15 {offsets = [0, 24], sizes = [8, 8], strides = [1, 1]} : vector<8x32xbf16> to vector<8x8xbf16>
    %84 = vector.extract_strided_slice %17 {offsets = [0, 24], sizes = [8, 8], strides = [1, 1]} : vector<8x32xbf16> to vector<8x8xbf16>
    %85 = vector.extract_strided_slice %19 {offsets = [0, 24], sizes = [8, 8], strides = [1, 1]} : vector<8x32xbf16> to vector<8x8xbf16>
    %cst_34 = arith.constant dense<0.000000e+00> : vector<8x8xf32>
    %86 = tpu.matmul %83, %84, %cst_34 {dimension_numbers = #tpu.dot_dimension_numbers<[1], [1], [0], [0], [0, 0, 1, 0], [], []>} : vector<8x8xbf16>, vector<8x8xbf16>, vector<8x8xf32> -> vector<8x8xf32>
    %87 = vector.broadcast %4 : vector<1x8xf32> to vector<8x8xf32>
    %88 = arith.addf %86, %87 : vector<8x8xf32>
    %cst_35 = arith.constant dense<0xFF800000> : vector<8xf32>
    %89 = vector.multi_reduction <maximumf>, %88, %cst_35 [1] : vector<8x8xf32> to vector<8xf32>
    %90 = vector.shape_cast %89 : vector<8xf32> to vector<8x1xf32>
    %91 = vector.broadcast %90 : vector<8x1xf32> to vector<8x8xf32>
    %92 = arith.subf %88, %91 : vector<8x8xf32>
    %93 = math.exp %92 : vector<8x8xf32>
    %cst_36 = arith.constant dense<0.000000e+00> : vector<8xf32>
    %94 = vector.multi_reduction <add>, %93, %cst_36 [1] : vector<8x8xf32> to vector<8xf32>
    %95 = vector.shape_cast %94 : vector<8xf32> to vector<8x1xf32>
    %96 = tpu.reciprocal %95 {approx = true} : vector<8x1xf32> -> vector<8x1xf32>
    %97 = vector.broadcast %96 : vector<8x1xf32> to vector<8x8xf32>
    %98 = arith.mulf %93, %97 : vector<8x8xf32>
    %99 = arith.truncf %98 : vector<8x8xf32> to vector<8x8xbf16>
    %c0_37 = arith.constant 0 : index
    %c3 = arith.constant 3 : index
    %c0_38 = arith.constant 0 : index
    %c0_39 = arith.constant 0 : index
    %100 = vector.load %arg9[%c0_37, %c3, %c0_38, %c0_39] : memref<1x4x8x8xbf16, #tpu.memory_space<vmem>>, vector<1x1x8x8xbf16>
    %101 = vector.shape_cast %100 : vector<1x1x8x8xbf16> to vector<8x8xbf16>
    %102 = vector.shape_cast %99 : vector<8x8xbf16> to vector<1x1x8x8xbf16>
    tpu.vector_store %arg9[%c0_37, %c3, %c0_38, %c0_39], %102 {strides = array<i32>} : memref<1x4x8x8xbf16, #tpu.memory_space<vmem>>, vector<1x1x8x8xbf16>,
    %cst_40 = arith.constant dense<0.000000e+00> : vector<8x8xf32>
    %103 = tpu.matmul %99, %85, %cst_40 {dimension_numbers = #tpu.dot_dimension_numbers<[1], [0], [0], [1], [0, 0, 1, 1], [], []>} : vector<8x8xbf16>, vector<8x8xbf16>, vector<8x8xf32> -> vector<8x8xf32>
    %104 = tpu.concatenate %40, %61, %82, %103 in 1 : vector<8x8xf32>, vector<8x8xf32>, vector<8x8xf32>, vector<8x8xf32> -> vector<8x32xf32>
    %105 = arith.truncf %104 : vector<8x32xf32> to vector<8x32xbf16>
    %c0_i32 = arith.constant 0 : i32
    %106 = arith.cmpi eq, %arg1, %c0_i32 : i32
    %107 = arith.extui %106 : i1 to i32
    %c0_i32_41 = arith.constant 0 : i32
    %108 = arith.cmpi ne, %107, %c0_i32_41 : i32
    scf.if %108 {
      %cst_52 = arith.constant 0.000000e+00 : f32
      %118 = vector.broadcast %cst_52 : f32 to vector<8x32xf32>
      %c0_53 = arith.constant 0 : index
      %c0_54 = arith.constant 0 : index
      %119 = vector.load %arg10[%c0_53, %c0_54] : memref<8x32xf32, #tpu.memory_space<vmem>>, vector<8x32xf32>
      tpu.vector_store %arg10[%c0_53, %c0_54], %118 {strides = array<i32>} : memref<8x32xf32, #tpu.memory_space<vmem>>, vector<8x32xf32>,
    } else {
    }
    %c0_42 = arith.constant 0 : index
    %c0_43 = arith.constant 0 : index
    %109 = vector.load %arg10[%c0_42, %c0_43] : memref<8x32xf32, #tpu.memory_space<vmem>>, vector<8x32xf32>
    %c0_44 = arith.constant 0 : index
    %c0_45 = arith.constant 0 : index
    %c0_46 = arith.constant 0 : index
    %110 = vector.load %arg6[%c0_44, %c0_45, %c0_46] : memref<1x32x32xbf16, #tpu.memory_space<vmem>>, vector<1x32x32xbf16>
    %111 = vector.shape_cast %110 : vector<1x32x32xbf16> to vector<32x32xbf16>
    %cst_47 = arith.constant dense<0.000000e+00> : vector<8x32xf32>
    %112 = tpu.matmul %105, %111, %cst_47 {dimension_numbers = #tpu.dot_dimension_numbers<[1], [0], [0], [1], [0, 0, 1, 1], [], []>} : vector<8x32xbf16>, vector<32x32xbf16>, vector<8x32xf32> -> vector<8x32xf32>
    %113 = arith.addf %109, %112 : vector<8x32xf32>
    %c0_48 = arith.constant 0 : index
    %c0_49 = arith.constant 0 : index
    %114 = vector.load %arg10[%c0_48, %c0_49] : memref<8x32xf32, #tpu.memory_space<vmem>>, vector<8x32xf32>
    tpu.vector_store %arg10[%c0_48, %c0_49], %113 {strides = array<i32>} : memref<8x32xf32, #tpu.memory_space<vmem>>, vector<8x32xf32>,
    %c0_i32_50 = arith.constant 0 : i32
    %115 = arith.cmpi eq, %arg1, %c0_i32_50 : i32
    %116 = arith.extui %115 : i1 to i32
    %c0_i32_51 = arith.constant 0 : i32
    %117 = arith.cmpi ne, %116, %c0_i32_51 : i32
    scf.if %117 {
      %c0_52 = arith.constant 0 : index
      %c0_53 = arith.constant 0 : index
      %118 = vector.load %arg10[%c0_52, %c0_53] : memref<8x32xf32, #tpu.memory_space<vmem>>, vector<8x32xf32>
      %c0_54 = arith.constant 0 : index
      %c0_55 = arith.constant 0 : index
      %119 = vector.load %arg7[%c0_54, %c0_55] : memref<3x32xf32, #tpu.memory_space<vmem>>, vector<1x32xf32>
      %120 = vector.shape_cast %119 : vector<1x32xf32> to vector<32xf32>
      %121 = vector.shape_cast %120 : vector<32xf32> to vector<1x32xf32>
      %122 = vector.broadcast %121 : vector<1x32xf32> to vector<8x32xf32>
      %123 = arith.addf %118, %122 : vector<8x32xf32>
      %cst_56 = arith.constant 0.000000e+00 : f32
      %124 = vector.broadcast %cst_56 : f32 to vector<8x32xf32>
      %125 = arith.maximumf %123, %124 : vector<8x32xf32>
      %126 = arith.addf %125, %1 : vector<8x32xf32>
      %cst_57 = arith.constant dense<0.000000e+00> : vector<8xf32>
      %127 = vector.multi_reduction <add>, %126, %cst_57 [1] : vector<8x32xf32> to vector<8xf32>
      %128 = vector.shape_cast %127 : vector<8xf32> to vector<8x1xf32>
      %cst_58 = arith.constant 3.200000e+01 : f32
      %129 = vector.broadcast %cst_58 : f32 to vector<8x1xf32>
      %130 = arith.divf %128, %129 : vector<8x1xf32>
      %131 = vector.broadcast %130 : vector<8x1xf32> to vector<8x32xf32>
      %132 = arith.subf %126, %131 : vector<8x32xf32>
      %133 = arith.mulf %132, %132 : vector<8x32xf32>
      %cst_59 = arith.constant dense<0.000000e+00> : vector<8xf32>
      %134 = vector.multi_reduction <add>, %133, %cst_59 [1] : vector<8x32xf32> to vector<8xf32>
      %135 = vector.shape_cast %134 : vector<8xf32> to vector<8x1xf32>
      %cst_60 = arith.constant 3.200000e+01 : f32
      %136 = vector.broadcast %cst_60 : f32 to vector<8x1xf32>
      %137 = arith.divf %135, %136 : vector<8x1xf32>
      %138 = vector.broadcast %130 : vector<8x1xf32> to vector<8x32xf32>
      %139 = arith.subf %126, %138 : vector<8x32xf32>
      %cst_61 = arith.constant 9.99999974E-6 : f32
      %140 = vector.broadcast %cst_61 : f32 to vector<8x1xf32>
      %141 = arith.addf %137, %140 : vector<8x1xf32>
      %142 = math.rsqrt %141 : vector<8x1xf32>
      %143 = vector.broadcast %142 : vector<8x1xf32> to vector<8x32xf32>
      %144 = arith.mulf %139, %143 : vector<8x32xf32>
      %c1_62 = arith.constant 1 : index
      %c0_63 = arith.constant 0 : index
      %145 = vector.load %arg7[%c1_62, %c0_63] : memref<3x32xf32, #tpu.memory_space<vmem>>, vector<1x32xf32>
      %146 = vector.shape_cast %145 : vector<1x32xf32> to vector<32xf32>
      %147 = vector.shape_cast %146 : vector<32xf32> to vector<1x32xf32>
      %148 = vector.broadcast %147 : vector<1x32xf32> to vector<8x32xf32>
      %149 = arith.mulf %144, %148 : vector<8x32xf32>
      %c2_64 = arith.constant 2 : index
      %c0_65 = arith.constant 0 : index
      %150 = vector.load %arg7[%c2_64, %c0_65] : memref<3x32xf32, #tpu.memory_space<vmem>>, vector<1x32xf32>
      %151 = vector.shape_cast %150 : vector<1x32xf32> to vector<32xf32>
      %152 = vector.shape_cast %151 : vector<32xf32> to vector<1x32xf32>
      %153 = vector.broadcast %152 : vector<1x32xf32> to vector<8x32xf32>
      %154 = arith.addf %149, %153 : vector<8x32xf32>
      %c0_66 = arith.constant 0 : index
      %c0_67 = arith.constant 0 : index
      %c0_68 = arith.constant 0 : index
      %155 = vector.load %arg8[%c0_66, %c0_67, %c0_68] : memref<1x8x32xf32, #tpu.memory_space<vmem>>, vector<1x8x32xf32>
      %156 = vector.shape_cast %155 : vector<1x8x32xf32> to vector<8x32xf32>
      %157 = vector.shape_cast %154 : vector<8x32xf32> to vector<1x8x32xf32>
      tpu.vector_store %arg8[%c0_66, %c0_67, %c0_68], %157 {strides = array<i32>} : memref<1x8x32xf32, #tpu.memory_space<vmem>>, vector<1x8x32xf32>,
    } else {
    }
    return
  }
  func.func @transform_0(%arg0: i32, %arg1: i32) -> (i32, i32, i32) {
    %c0_i32 = arith.constant 0 : i32
    %c0_i32_0 = arith.constant 0 : i32
    %c0_i32_1 = arith.constant 0 : i32
    return %arg0, %c0_i32, %c0_i32_0 : i32, i32, i32
  }
  func.func @transform_1(%arg0: i32, %arg1: i32) -> (i32, i32, i32) {
    %c0_i32 = arith.constant 0 : i32
    %c0_i32_0 = arith.constant 0 : i32
    %c0_i32_1 = arith.constant 0 : i32
    return %arg0, %c0_i32, %c0_i32_0 : i32, i32, i32
  }
  func.func @transform_2(%arg0: i32, %arg1: i32) -> (i32, i32, i32) {
    %c0_i32 = arith.constant 0 : i32
    %c0_i32_0 = arith.constant 0 : i32
    %c0_i32_1 = arith.constant 0 : i32
    return %arg1, %c0_i32, %c0_i32_0 : i32, i32, i32
  }
  func.func @transform_3(%arg0: i32, %arg1: i32) -> (i32, i32, i32) {
    %c0_i32 = arith.constant 0 : i32
    %c0_i32_0 = arith.constant 0 : i32
    %c0_i32_1 = arith.constant 0 : i32
    return %arg1, %c0_i32, %c0_i32_0 : i32, i32, i32
  }
  func.func @transform_4(%arg0: i32, %arg1: i32) -> (i32, i32, i32) {
    %c0_i32 = arith.constant 0 : i32
    %c0_i32_0 = arith.constant 0 : i32
    %c0_i32_1 = arith.constant 0 : i32
    return %arg1, %c0_i32, %c0_i32_0 : i32, i32, i32
  }
  func.func @transform_5(%arg0: i32, %arg1: i32) -> (i32, i32) {
    %c0_i32 = arith.constant 0 : i32
    %c0_i32_0 = arith.constant 0 : i32
    %c0_i32_1 = arith.constant 0 : i32
    return %c0_i32, %c0_i32_0 : i32, i32
  }
  func.func @transform_6(%arg0: i32, %arg1: i32) -> (i32, i32, i32) {
    %c0_i32 = arith.constant 0 : i32
    %c0_i32_0 = arith.constant 0 : i32
    %c0_i32_1 = arith.constant 0 : i32
    return %arg0, %c0_i32, %c0_i32_0 : i32, i32, i32
  }
  func.func @transform_7(%arg0: i32, %arg1: i32) -> (i32, i32, i32, i32) {
    %c0_i32 = arith.constant 0 : i32
    %c0_i32_0 = arith.constant 0 : i32
    %c0_i32_1 = arith.constant 0 : i32
    return %arg0, %arg1, %c0_i32, %c0_i32_0 : i32, i32, i32, i32
  }
}

</mosaic_0001>

<bundles_post_ra>
// kernel: tpu_custom_call.1
= control target key start
LH: loop header
LB: loop body
LE: loop exit
PB: predicated region body
PF: predicated region fallthrough
CT: control target
= control target key end

     0   :  { %s2177_s0 = inlined_call_operand.hbm [shape: f32[2,8,32], index: 0, kind: input, shape index: {}]   ;;  %s2178_s1 = inlined_call_operand.hbm [shape: f32[2,1,8], index: 1, kind: input, shape index: {}]   ;;  %s2179_s2 = inlined_call_operand.hbm [shape: bf16[1,32,96], index: 2, kind: input, shape index: {}]   ;;  %s2180_s3 = inlined_call_operand.vmem [shape: f32[1,1,96], index: 3, kind: input, shape index: {}]   ;;  %s2181_s4 = inlined_call_operand.hbm [shape: bf16[1,32,32], index: 4, kind: input, shape index: {}]   ;;  %s2182_s5 = inlined_call_operand.vmem [shape: f32[3,32], index: 5, kind: input, shape index: {}]   ;;  %s2183_s6 = inlined_call_operand.hbm [shape: f32[2,8,32], index: 6, kind: output, shape index: {0}]   ;;  %s2184_s7 = inlined_call_operand.hbm [shape: bf16[2,4,8,8], index: 7, kind: output, shape index: {1}]  }
   0x1   :  { %2190 = sst [smem:[#allocation24_spill]] %s2177_s0 }
   0x2   :  { %2191 = sst [smem:[#allocation25_spill]] %s2179_s2 }
   0x3   :  { %2192 = sst [smem:[#allocation26_spill]] %s2181_s4 }
   0x4   :  { %13 = vsyncpa [#allocation4], 0 }
   0x5   :  { %15 = vsyncpa [#allocation4 + $0x1], 0 }
   0x6   :  { %16 = vsyncpa [#allocation7], 0 }
   0x7   :  { %18 = vsyncpa [#allocation7 + $0x1], 0 }
   0x8   :  { %19 = vsyncpa [#allocation10], 0 }
   0x9   :  { %20 = vsyncpa [#allocation5], 0 }
   0xa   :  { %22 = vsyncpa [#allocation5 + $0x1], 0 }
   0xb   :  { %23 = vsyncpa [#allocation13], 0 }
   0xc   :  { %25 = vsyncpa [#allocation13 + $0x1], 0  ;;  %s1835_s24 = smov 0   ;;  %s1837_s25 = smov 0  }
   0xd   :  { %s1839_s26 = smov 0   ;;  %s1841_s27 = smov 0  }
   0xe   :  { %s1843_s28 = smov 0   ;;  %s1845_s29 = smov 0  }
   0xf LB: > { %2193 = sst [smem:[#allocation20_spill]] %s1756_s26  ;;  %s1866_s30 = sadd.s32 4294967295, %s1768_s29   ;;  %s1768_s29 = sphi %s1845_s29, %s31_s29   ;;  %s1764_s28 = sphi %s1843_s28, %s2220_s28   ;;  %s1760_s27 = sphi %s1841_s27, %s2219_s27   ;;  %s1756_s26 = sphi %s1839_s26, %s2215_s26   ;;  %s1752_s25 = sphi %s1837_s25, %s2218_s25   ;;  %s1748_s24 = sphi %s1835_s24, %s2217_s24  }
  0x10   : > { %2194 = sst [smem:[#allocation21_spill]] %s1768_s29  ;;  %s1273_s8 = sadd.s32 4294967294, %s1768_s29  }
  0x11   : > { %p63_p0 = scmp.ne.s32.totalorder %s1752_s25, %s1748_s24  ;;  %p2185_p1 = scmp.eq.s32.totalorder %s1866_s30, 0 }
  0x12   : > { %p218_p3 = scmp.eq.s32.totalorder %s1273_s8, 1  ;;  %p1274_p5 = scmp.ge.s32.totalorder %s1768_s29, 1 }
  0x13   : > { %p1875_p4 = por %p2185_p1, %p63_p0  ;;  %p253_p7 = scmp.lt.s32.totalorder %s1768_s29, 3 }
  0x14   : > { %p1880_p6 = por %p218_p3, %p63_p0  ;;  %s1770_s12 = smov [#allocation8]  }
  0x15   : > { %p1885_p8 = pnand %p1274_p5, %p253_p7  ;;  %s268_s13 = sshll.u32 %s1770_s12, 4  ;;  %s269_s13 = int_to_ptr.vmem [resolvable:$true] %s268_s13 }
  0x16   : > { %s2196_s10 = scalar_select %p1880_p6, 1, 0 }
  0x17   : > { %p1420_p9 = pneg %p1885_p8  ;;  %s1771_s15 = smov [#allocation9]  }
  0x18   : > { %s290_s16 = sshll.u32 %s1771_s15, 4  ;;  %s1549_s17 = scalar_lea.vmem %s269_s13, 256  ;;  %s291_s16 = int_to_ptr.vmem [resolvable:$true] %s290_s16 }
  0x19   : > { %p1894_p11 = pnand %p1420_p9, %p2185_p1  ;;  %p1550_p13 = scmp.ne.s32.totalorder %s269_s13, %s1549_s17 }
  0x1a   : > { %p1557_p5 = scmp.lt.s32.totalorder %s269_s13, %s269_s13  ;;  %p1558_p7 = scmp.lt.s32.totalorder %s1549_s17, %s1549_s17 }
  0x1b   : > { %p1540_p12 = pneg %p1894_p11 }
  0x1c   : > { %p1559_p10 = por %p1558_p7, %p1557_p5 }
  0x1d   : > { %p1552_p0 = pnand %p1550_p13, %p1540_p12 }
  0x1f   : > { %p1553_p3 = pneg %p1552_p0 }
  0x21   : > { %p1560_p9 = pnand %p1559_p10, %p1553_p3 }
  0x23   : > { %1563 = shalt.err (!%p1560_p9)
}
  0x24   : > { %s1772_s18 = smov 64   ;;  %s1773_s19 = smov 4  }
  0x25   : > { %s2199_s2 = sld [smem:[#allocation25_spill]]  ;;  %s1575_s22 = scalar_lea.vmem %s291_s16, 256 }
  0x26   : > { %p1576_p1 = scmp.ne.s32.totalorder %s291_s16, %s1575_s22  ;;  %p1583_p2 = scmp.lt.s32.totalorder %s291_s16, %s291_s16 }
  0x27   : > { %p1584_p6 = scmp.lt.s32.totalorder %s1575_s22, %s1575_s22 }
  0x28   : > { %p1578_p13 = pnand %p1576_p1, %p1540_p12 }
  0x29   : > { %p1585_p5 = por %p1584_p6, %p1583_p2 }
  0x2a   : > { %p1579_p0 = pneg %p1578_p13 }
  0x2b   : > { %1423 = dma.hbm_to_vmem [thread:$0]  (!%p1894_p11), %s2199_s2, 256, %s269_s13, [#allocation7], %s1772_s18, %s1772_s18, %s1773_s19  }
  0x2c   : > { %p1586_p10 = pnand %p1585_p5, %p1579_p0 }
  0x2e   : > { %1589 = shalt.err (!%p1586_p10)
}
  0x2f   : > { %s2200_s4 = sld [smem:[#allocation26_spill]]  ;;  %s43_s12 = sadd.s32 1, %s1764_s28 }
  0x30   : > { %s50_s13 = sadd.s32 1, %s1756_s26  ;;  %p45_p1 = scmp.ge.s32.totalorder %s43_s12, 2 }
  0x31   : > { %p57_p2 = scmp.ne.s32.totalorder %s1756_s26, %s1752_s25  ;;  %p58_p6 = scmp.eq.s32.totalorder %s1768_s29, 0 }
  0x32   : > { %p1443_p12 = scmp.lt.s32.totalorder %s1768_s29, 2  ;;  %s2222_s12 = smov (%p45_p1, %s43_s12), 0 }
  0x33   : > { %2201 = sst [smem:[#allocation22_spill]] %s2222_s12  ;;  %p59_p3 = por %p58_p6, %p57_p2 }
  0x34   : > { %p2202_p7 = scmp.eq.s32.totalorder %s1866_s30, 1  ;;  %s47_s15 = ssub.s32 %s1764_s28, %s2222_s12 }
  0x35   : > { %1426 = dma.hbm_to_vmem [thread:$0]  (!%p1894_p11), %s2200_s4, 256, %s291_s16, [#allocation10], %s1772_s18, %s1772_s18, %s1773_s19  }
  0x36   : > { %p1926_p9 = por %p2202_p7, %p57_p2  ;;  %s1933_s17 = sand.u32 1, %s1756_s26  }
  0x37   : > { %p48_p11 = scmp.eq.s32.totalorder %s47_s15, 0  ;;  %s1279_s16 = sshll.u32 %s1933_s17, 3 }
  0x38   : > { %s1280_s18 = sshll.u32 %s1764_s28, 7  ;;  %s2205_s0 = sld [smem:[#allocation24_spill]] }
  0x39   : > { %s1938_s19 = scalar_select %p48_p11, %s1756_s26, %s50_s13  }
  0x3a   : > { %s311_s23 = scalar_lea.vmem [#allocation3], %s1279_s16  ;;  %p1945_p13 = pnand %p1443_p12, %p59_p3 }
  0x3b   : > { %2204 = sst [smem:[#allocation23_spill]] %s1938_s19  ;;  %s318_s8 = sshll.u32 %s311_s23, 4  ;;  %s319_s8 = int_to_ptr.vmem [resolvable:$true] %s318_s8 }
  0x3c   : > { %s325_s4 = sand.u32 1, %s1768_s29   ;;  %s308_s15 = scalar_lea.sflag [#allocation4], %s1933_s17 }
  0x3d   : > { %p1592_p0 = pneg %p1945_p13  ;;  %s1603_s13 = scalar_lea.vmem %s319_s8, 128 }
  0x3e   : > { %s316_s22 = scalar_lea.hbm %s2205_s0, %s1280_s18  ;;  %p1604_p5 = scmp.ne.s32.totalorder %s319_s8, %s1603_s13 }
  0x3f   : > { %s1774_s16 = smov [#allocation3]  }
  0x40   : > { %p1606_p10 = pnand %p1604_p5, %p1592_p0  ;;  %s1608_s18 = sshll.u32 %s1774_s16, 4  ;;  %s1609_s18 = int_to_ptr.vmem [resolvable:$false] %s1608_s18 }
  0x41   : > { %s1610_s20 = scalar_lea.vmem %s1609_s18, 256  ;;  %p1611_p2 = scmp.lt.s32.totalorder %s319_s8, %s1609_s18 }
  0x42   : > { %p1607_p1 = pneg %p1606_p10  ;;  %p1612_p6 = scmp.lt.s32.totalorder %s1610_s20, %s1603_s13 }
  0x44   : > { %p1613_p12 = por %p1612_p6, %p1611_p2 }
  0x46   : > { %p1614_p3 = pnand %p1613_p12, %p1607_p1 }
  0x48   : > { %1617 = shalt.err (!%p1614_p3)
}
  0x49   : > { %1430 = dma.hbm_to_vmem [thread:$0]  (!%p1945_p13), %s316_s22, 128, %s319_s8, %s308_s15  }
  0x4a   : > { %s1281_s21 = sshll.u32 %s1764_s28, 4  ;;  %s328_s19 = scalar_lea.vmem [#allocation6], %s1933_s17 }
  0x4b   : > { %s333_s12 = scalar_lea.hbm %s2178_s1, %s1281_s21  ;;  %s335_s16 = sshll.u32 %s328_s19, 4  ;;  %s336_s16 = int_to_ptr.vmem [resolvable:$true] %s335_s16 }
  0x4c   : > { %s326_s26 = scalar_lea.sflag [#allocation7], %s325_s4  ;;  %s1631_s18 = scalar_lea.vmem %s336_s16, 16 }
  0x4d   : > { %p1632_p7 = scmp.ne.s32.totalorder %s336_s16, %s1631_s18  ;;  %s1775_s13 = smov [#allocation6]  }
  0x4e   : > { %s1636_s20 = sshll.u32 %s1775_s13, 4  ;;  %s1637_s20 = int_to_ptr.vmem [resolvable:$false] %s1636_s20 }
  0x4f   : > { %p1634_p11 = pnand %p1632_p7, %p1592_p0  ;;  %s1638_s29 = scalar_lea.vmem %s1637_s20, 32 }
  0x50   : > { %p1639_p10 = scmp.lt.s32.totalorder %s336_s16, %s1637_s20  ;;  %p1640_p1 = scmp.lt.s32.totalorder %s1638_s29, %s1631_s18 }
  0x51   : > { %p1635_p5 = pneg %p1634_p11 }
  0x52   : > { %p1641_p2 = por %p1640_p1, %p1639_p10 }
  0x54   : > { %p1642_p6 = pnand %p1641_p2, %p1635_p5 }
  0x56   : > { %1645 = shalt.err (!%p1642_p6)
}
  0x57   : > { %1433 = dma.hbm_to_vmem [thread:$0]  (!%p1945_p13), %s333_s12, 16, %s336_s16, %s326_s26  }
  0x58   : > { %344 = sbr.rel (%p1885_p8) target bundleno = 1844 (0x734), region = 44  ;;  %s1971_s0 = sand.u32 (!%p1885_p8), 1, %s1752_s25  }
  0x59   : > { %s1283_s4 = sshll.u32 (!%p1885_p8), %s1971_s0, 3  ;;  %s347_s17 = scalar_lea.sflag (!%p1885_p8), [#allocation4], %s1971_s0 }
  0x5a   : > { %s350_s29 = scalar_lea.vmem (!%p1885_p8), [#allocation3], %s1283_s4 }
  0x5d   : > { %1723 = dma.done.wait (%p1875_p4), %s347_s17, 128  }
  0x5e   : > { %1725 = vsyncadd (%p1875_p4), %s347_s17, 4294967168  ;;  %s355_s2 = sand.u32 1, %s1866_s30   ;;  %s358_s11 = scalar_lea.vmem [#allocation6], %s1971_s0 }
  0x5f   : > { %s356_s26 = scalar_lea.sflag [#allocation7], %s355_s2 }
  0x60   : > { %1727 = dma.done.wait (%p1875_p4), %s356_s26, 16  }
  0x61   : > { %1729 = vsyncadd (%p1875_p4), %s356_s26, 4294967280  ;;  %p2207_p8 = scmp.eq.s32.totalorder %s1866_s30, 0 }
  0x63   : > { %1731 = dma.done.wait (%p2207_p8), [#allocation7], 256   ;;  %p2208_p13 = pmov %p2207_p8 }
  0x64   : > { %p2209_p0 = pmov %p2207_p8 }
  0x65   : > { %1733 = vsyncadd (%p2208_p13), [#allocation7], 4294967040 }
  0x66   : > { %1735 = dma.done.wait (%p2209_p0), [#allocation10], 256   ;;  %p2210_p12 = pmov %p2209_p0 }
  0x67   : > { %vm440_vm0 = vcmask 261120   ;;  %v1776_v0 = vmov 0.0   ;;  %vm1777_vm1 = vmmov 0   ;;  %v1516_v1 = vld [vmem:[#allocation8 + $0x8] sm:$0xff]   ;;  %v1517_v2 = vld [vmem:[#allocation8] sm:$0xff]   ;;  %s1778_s12 = smov 96  }
  0x68   : > { %1737 = vsyncadd (%p2210_p12), [#allocation10], 4294967040  ;;  %1340 = vmatprep.subr.bf16.mxu0 %v1776_v0  ;;  %1344 = vmatprep.mubr.msk.bf16.mxu0 %vm1777_vm1, %v1776_v0  ;;  %965 = vst.msk [vmem:[#allocation2] sm:$0xff] %vm440_vm0, %v1776_v0  ;;  %v2003_v3 = vld [vmem:[%s350_s29] sm:$0xff]  ;;  %v1288_v5 = vld [vmem:[%s2180_s3] ss:$0 sm:$0xff] }
  0x69   : > { %1348 = vmatprep.subr.bf16.mxu1 %v1776_v0  ;;  %1350 = vmatprep.mubr.msk.bf16.mxu1 %vm1777_vm1, %v1776_v0  ;;  %v415_v4 = vpack.c.bf16 %v2003_v3, %v2003_v3  ;;  %s1779_s19 = smov 120   ;;  %s1780_s22 = smov 88   ;;  %vm496_vm2 = vcmask 64512   ;;  %v1292_v25 = vld [vmem:[%s358_s11] ss:$0 sm:$0xff]  ;;  %vm555_vm3 = vcmask 60416  }
  0x6a   : > { %1341 = vmatpush3.bf16.msra.mxu0 %v1516_v1  ;;  %s1781_s8 = smov 80   ;;  %s1782_s15 = smov 112   ;;  %vm562_vm4 = vcmask 1043456   ;;  %vm956_vm5 = vcmask 130048   ;;  %vm958_vm6 = vcmask 195584  }
  0x6b   : > { %1342 = vmatprep.subr.bf16.mxu0 %v1776_v0  ;;  %s1783_s21 = smov 72   ;;  %s1784_s23 = smov 104  }
  0x6c   : > { %s1785_s16 = smov 56   ;;  %s1786_s18 = smov 64  }
  0x6d   : > { %s1787_s13 = smov 40   ;;  %s1788_s20 = smov 48  }
  0x6e   : > { %1343 = vmatpush3.bf16.msra.mxu0 %v1517_v2  ;;  %s1287_s17 = sshll.u32 %s1971_s0, 4  ;;  %s1789_s2 = smov 8  }
  0x6f   : > { %1354 = vmatprep.subr.bf16.mxu0 %v1776_v0  ;;  %s2057_s29 = scalar_lea.vmem [#allocation12], %s1287_s17  ;;  %s1790_s26 = smov 16  }
  0x70   : > { %s1791_s11 = smov 24  }
  0x71   : > { %1345 = vmatmul.mubr.msk.bf16.vlgmr.msra.gmra.mxu0 %vm440_vm0, %v415_v4 }
  0x72   : > { %1356 = vmatprep.mubr.msk.bf16.mxu0 %vm1777_vm1, %v1776_v0 }
 0x131   : > { %v478_v6 = vpop.f32.mrf.mxu0 }
 0x132   : > { %v479_v7 = vadd.f32 %v1288_v5, %v478_v6 }
 0x133   : > { %v1346_v8 = vpop.f32.mrf.mxu0 }
 0x134   : > { %v484_v9 = vmul.f32 0.35355338, %v479_v7  ;;  %v2015_v10 = vpack.c.bf16 %v479_v7, %v479_v7 }
 0x135   : > { %v481_v11 = vpop.f32.mrf.mxu0 }
 0x136   : > { %v485_v12 = vpack.c.bf16 %v484_v9, %v484_v9  ;;  %494 = vrot.lane.b32.xlu0 %v2015_v10, %s1778_s12  ;;  %s1317_s12 = sshll.u32 %s1760_s27, 8 }
 0x137   : > { %v1347_v13 = vpop.f32.mrf.mxu0 }
 0x138   : > { %607 = vrot.lane.b32.xlu1 %v485_v12, %s1779_s19  ;;  %s1101_s19 = sshll.u32 %s2057_s29, 4  ;;  %s2101_s19 = int_to_ptr.vmem [resolvable:$true] %s1101_s19 }
 0x13a   : > { %609 = vrot.lane.b32.xlu0 %v2015_v10, %s1780_s22 }
 0x13c   : > { %721 = vrot.lane.b32.xlu1 %v2015_v10, %s1781_s8 }
 0x13e   : > { %719 = vrot.lane.b32.xlu0 %v485_v12, %s1782_s15  ;;  %s2099_s15 = scalar_lea.hbm %s2184_s7, %s1317_s12 }
 0x140   : > { %833 = vrot.lane.b32.xlu1 %v2015_v10, %s1783_s21  ;;  %s1073_s21 = scalar_lea.sflag [#allocation13], %s1971_s0 }
 0x142   : > { %831 = vrot.lane.b32.xlu0 %v485_v12, %s1784_s23  ;;  %s1646_s23 = scalar_lea.vmem %s2101_s19, 256 }
 0x143   : > { %p1647_p4 = scmp.ne.s32.totalorder %s2101_s19, %s1646_s23 }
 0x145   : > { %p1648_p3 = pnand %p1647_p4, %p1926_p9 }
 0x147   : > { %p1649_p7 = pneg %p1648_p3 }
 0x1a8   : > { %v495_v14 = vpop.permute.xlu0 %494 }
 0x1a9   : > { %v501_v15 = vsel %vm496_vm2, %v495_v14, 0 }
 0x1aa   : > { %1349 = vmatpush3.bf16.xpose.msra.mxu1 %v501_v15  ;;  %v608_v17 = vpop.permute.xlu1 %607 }
 0x1ab   : > { %1360 = vmatprep.subr.bf16.mxu1 %v1776_v0 }
 0x1ac   : > { %v610_v16 = vpop.permute.xlu0 %609 }
 0x1ad   : > { %v615_v18 = vsel %vm496_vm2, %v610_v16, 0 }
 0x1ae   : > { %v722_v19 = vpop.permute.xlu1 %721 }
 0x1af   : > { %v727_v20 = vsel %vm496_vm2, %v722_v19, 0 }
 0x1b0   : > { %v720_v22 = vpop.permute.xlu0 %719 }
 0x1b1   : > { %1351 = vmatmul.mubr.msk.bf16.vlgmr.msra.gmra.mxu1 %vm496_vm2, %v485_v12 }
 0x1b2   : > { %1361 = vmatpush3.bf16.xpose.msra.mxu1 %v615_v18  ;;  %1362 = vmatprep.mubr.msk.bf16.mxu1 %vm1777_vm1, %v1776_v0  ;;  %v834_v21 = vpop.permute.xlu1 %833 }
 0x1b3   : > { %1372 = vmatprep.subr.bf16.mxu1 %v1776_v0  ;;  %v839_v23 = vsel %vm496_vm2, %v834_v21, 0 }
 0x1b4   : > { %v832_v24 = vpop.permute.xlu0 %831 }
 0x1b9   : > { %1363 = vmatmul.mubr.msk.bf16.vlgmr.msra.gmra.mxu1 %vm496_vm2, %v608_v17 }
 0x1ba   : > { %1373 = vmatpush3.bf16.xpose.msra.mxu1 %v727_v20  ;;  %1374 = vmatprep.mubr.msk.bf16.mxu1 %vm1777_vm1, %v1776_v0 }
 0x1bb   : > { %1384 = vmatprep.subr.bf16.mxu1 %v1776_v0 }
 0x1c1   : > { %1375 = vmatmul.mubr.msk.bf16.vlgmr.msra.gmra.mxu1 %vm496_vm2, %v720_v22 }
 0x1c2   : > { %1385 = vmatpush3.bf16.xpose.msra.mxu1 %v839_v23  ;;  %1386 = vmatprep.mubr.msk.bf16.mxu1 %vm1777_vm1, %v1776_v0 }
 0x1c3   : > { %1396 = vmatprep.subr.bf16.mxu1 %v1776_v0 }
 0x1c9   : > { %1387 = vmatmul.mubr.msk.bf16.vlgmr.msra.gmra.mxu1 %vm496_vm2, %v832_v24 }
 0x1ca   : > { %1400 = vmatprep.mubr.msk.bf16.mxu1 %vm1777_vm1, %v1776_v0 }
 0x271   : > { %v537_v26 = vpop.f32.mrf.mxu1 }
 0x272   : > { %v538_v27 = vadd.f32 %v1292_v25, %v537_v26 }
 0x273   : > { %v1352_v28 = vpop.f32.mrf.mxu1 }
 0x274   : > { %v543_v29 = vsel %vm496_vm2, %v538_v27, -inf }
 0x275   : > { %544 = vmax.xlane.f32.xlu1 %v543_v29  ;;  %v540_v30 = vpop.f32.mrf.mxu1 }
 0x277   : > { %v1353_v31 = vpop.f32.mrf.mxu1 }
 0x279   : > { %v651_v32 = vpop.f32.mrf.mxu1 }
 0x27a   : > { %v652_v33 = vadd.f32 %v1292_v25, %v651_v32 }
 0x27b   : > { %v1364_v34 = vpop.f32.mrf.mxu1 }
 0x27c   : > { %v657_v35 = vsel %vm496_vm2, %v652_v33, -inf }
 0x27d   : > { %658 = vmax.xlane.f32.xlu0 %v657_v35  ;;  %v654_v36 = vpop.f32.mrf.mxu1 }
 0x27f   : > { %v1365_v37 = vpop.f32.mrf.mxu1 }
 0x281   : > { %v763_v38 = vpop.f32.mrf.mxu1 }
 0x282   : > { %v764_v39 = vadd.f32 %v1292_v25, %v763_v38 }
 0x283   : > { %v1376_v40 = vpop.f32.mrf.mxu1 }
 0x284   : > { %v769_v41 = vsel %vm496_vm2, %v764_v39, -inf  ;;  %v1518_v40 = vld [vmem:[#allocation9 + $0x8] sm:$0xff]  }
 0x285   : > { %770 = vmax.xlane.f32.xlu0 %v769_v41  ;;  %v766_v42 = vpop.f32.mrf.mxu1  ;;  %1397 = vmatpush3.bf16.msra.mxu1 %v1518_v40  ;;  %v1519_v41 = vld [vmem:[#allocation9] sm:$0xff]  }
 0x286   : > { %1398 = vmatprep.subr.bf16.mxu1 %v1776_v0 }
 0x287   : > { %v1377_v43 = vpop.f32.mrf.mxu1 }
 0x289   : > { %v875_v44 = vpop.f32.mrf.mxu1  ;;  %1399 = vmatpush3.bf16.msra.mxu1 %v1519_v41 }
 0x28a   : > { %v876_v45 = vadd.f32 %v1292_v25, %v875_v44 }
 0x28b   : > { %v1388_v46 = vpop.f32.mrf.mxu1 }
 0x28c   : > { %v881_v47 = vsel %vm496_vm2, %v876_v45, -inf }
 0x28d   : > { %882 = vmax.xlane.f32.xlu1 %v881_v47  ;;  %v878_v48 = vpop.f32.mrf.mxu1 }
 0x28f   : > { %v1389_v49 = vpop.f32.mrf.mxu1 }
 0x2fe   : > { %v545_v50 = vpop.xlane.xlu1 %544 }
 0x2ff   : > { %v546_v51 = vsub.f32 %v538_v27, %v545_v50 }
 0x301   : > { %v547_v52 = vmul.f32 1.442695, %v546_v51 }
 0x303   : > { %1520 = vpow2.f32 %v547_v52 }
 0x306   : > { %v659_v53 = vpop.xlane.xlu0 %658 }
 0x307   : > { %v660_v54 = vsub.f32 %v652_v33, %v659_v53 }
 0x309   : > { %v661_v55 = vmul.f32 1.442695, %v660_v54 }
 0x30b   : > { %1522 = vpow2.f32 %v661_v55 }
 0x30e   : > { %v771_v56 = vpop.xlane.xlu0 %770 }
 0x30f   : > { %v772_v57 = vsub.f32 %v764_v39, %v771_v56  ;;  %v966_v56 = vld [vmem:[#allocation2] sm:$0xff] }
 0x310   : > { %v1521_v58 = vpop.eup %1520 }
 0x311   : > { %v773_v59 = vmul.f32 1.442695, %v772_v57  ;;  %v549_v60 = vsel %vm496_vm2, %v1521_v58, 0.0 }
 0x312   : > { %550 = vadd.xlane.f32.xlu0 %v549_v60 }
 0x313   : > { %1524 = vpow2.f32 %v773_v59 }
 0x316   : > { %v883_v2 = vpop.xlane.xlu1 %882 }
 0x317   : > { %v884_v4 = vsub.f32 %v876_v45, %v883_v2 }
 0x318   : > { %v1523_v61 = vpop.eup %1522 }
 0x319   : > { %v663_v62 = vsel %vm496_vm2, %v1523_v61, 0.0  ;;  %v885_v5 = vmul.f32 1.442695, %v884_v4 }
 0x31a   : > { %664 = vadd.xlane.f32.xlu1 %v663_v62  ;;  %v1307_v62 = vld [vmem:[%s2182_s5] ss:$0 sm:$0xff] }
 0x31b   : > { %1526 = vpow2.f32 %v885_v5 }
 0x320   : > { %v1525_v63 = vpop.eup %1524 }
 0x321   : > { %v775_v1 = vsel %vm496_vm2, %v1525_v63, 0.0 }
 0x322   : > { %776 = vadd.xlane.f32.xlu0 %v775_v1 }
 0x328   : > { %v1527_v6 = vpop.eup %1526 }
 0x329   : > { %v887_v7 = vsel %vm496_vm2, %v1527_v6, 0.0 }
 0x32b   : > { %671 = vrot.lane.b32.xlu1 %v2015_v10, %s1785_s16  ;;  %s1792_s16 = smov [#allocation12]  }
 0x338   : > { %557 = vrot.lane.b32.xlu0 %v2015_v10, %s1786_s18 }
 0x33c   : > { %895 = vrot.lane.b32.xlu0 %v2015_v10, %s1787_s13  ;;  %s1650_s13 = sshll.u32 %s1792_s16, 4  ;;  %s1651_s13 = int_to_ptr.vmem [resolvable:$false] %s1650_s13 }
 0x33d   : > { %p1653_p11 = scmp.lt.s32.totalorder %s2101_s19, %s1651_s13 }
 0x34f   : > { %888 = vadd.xlane.f32.xlu1 %v887_v7 }
 0x360   : > { %783 = vrot.lane.b32.xlu1 %v2015_v10, %s1788_s20  ;;  %s1652_s20 = scalar_lea.vmem %s1651_s13, 512 }
 0x361   : > { %p1654_p5 = scmp.lt.s32.totalorder %s1652_s20, %s1646_s23 }
 0x363   : > { %p1655_p10 = por %p1654_p5, %p1653_p11 }
 0x365   : > { %p1656_p1 = pnand %p1655_p10, %p1649_p7 }
 0x39b   : > { %v551_v8 = vpop.xlane.xlu0 %550 }
 0x39c   : > { %1528 = vrcp.f32 %v551_v8 }
 0x3a3   : > { %v665_v9 = vpop.xlane.xlu1 %664 }
 0x3a4   : > { %1530 = vrcp.f32 %v665_v9 }
 0x3a7   : > { %v672_v17 = vpop.permute.xlu1 %671 }
 0x3a8   : > { %v677_v19 = vsel %vm562_vm4, %v672_v17, 0 }
 0x3a9   : > { %v1529_v11 = vpop.eup %1528 }
 0x3aa   : > { %v553_v12 = vmul.f32 %v1529_v11, %v1521_v58 }
 0x3ab   : > { %v777_v13 = vpop.xlane.xlu0 %776 }
 0x3ac   : > { %1532 = vrcp.f32 %v777_v13  ;;  %v554_v14 = vpack.c.bf16 %v553_v12, %v553_v12 }
 0x3ae   : > { %556 = vst.msk [vmem:[%s2057_s29] sm:$0xf] %vm555_vm3, %v554_v14 }
 0x3af   : > { %v558_v15 = vpop.permute.xlu0 %557 }
 0x3b0   : > { %v564_v10 = vsel %vm562_vm4, %v558_v15, 0 }
 0x3b1   : > { %v1531_v16 = vpop.eup %1530  ;;  %1355 = vmatpush3.bf16.msra.mxu0 %v564_v10 }
 0x3b2   : > { %1366 = vmatprep.subr.bf16.mxu0 %v1776_v0  ;;  %v667_v18 = vmul.f32 %v1531_v16, %v1523_v61 }
 0x3b3   : > { %v896_v27 = vpop.permute.xlu0 %895 }
 0x3b4   : > { %1357 = vmatmul.mubr.msk.bf16.vlgmr.msra.gmra.mxu0 %vm496_vm2, %v554_v14  ;;  %v668_v20 = vpack.c.bf16 %v667_v18, %v667_v18  ;;  %v901_v28 = vsel %vm562_vm4, %v896_v27, 0 }
 0x3b5   : > { %1367 = vmatpush3.bf16.msra.mxu0 %v677_v19  ;;  %1368 = vmatprep.mubr.msk.bf16.mxu0 %vm1777_vm1, %v1776_v0 }
 0x3b6   : > { %1296 = vst.msk [vmem:[%s2057_s29 + $0x4] sm:$0xf] %vm555_vm3, %v668_v20  ;;  %1378 = vmatprep.subr.bf16.mxu0 %v1776_v0 }
 0x3b9   : > { %v1533_v21 = vpop.eup %1532 }
 0x3ba   : > { %v779_v22 = vmul.f32 %v1533_v21, %v1525_v63 }
 0x3bc   : > { %1369 = vmatmul.mubr.msk.bf16.vlgmr.msra.gmra.mxu0 %vm496_vm2, %v668_v20  ;;  %v780_v23 = vpack.c.bf16 %v779_v22, %v779_v22 }
 0x3bd   : > { %1380 = vmatprep.mubr.msk.bf16.mxu0 %vm1777_vm1, %v1776_v0 }
 0x3be   : > { %1299 = vst.msk [vmem:[%s2057_s29 + $0x8] sm:$0xf] %vm555_vm3, %v780_v23 }
 0x3d8   : > { %v889_v24 = vpop.xlane.xlu1 %888 }
 0x3d9   : > { %1534 = vrcp.f32 %v889_v24 }
 0x3dc   : > { %v784_v25 = vpop.permute.xlu1 %783 }
 0x3dd   : > { %v789_v26 = vsel %vm562_vm4, %v784_v25, 0 }
 0x3de   : > { %1379 = vmatpush3.bf16.msra.mxu0 %v789_v26 }
 0x3df   : > { %1390 = vmatprep.subr.bf16.mxu0 %v1776_v0 }
 0x3e1   : > { %1381 = vmatmul.mubr.msk.bf16.vlgmr.msra.gmra.mxu0 %vm496_vm2, %v780_v23 }
 0x3e2   : > { %1391 = vmatpush3.bf16.msra.mxu0 %v901_v28  ;;  %1392 = vmatprep.mubr.msk.bf16.mxu0 %vm1777_vm1, %v1776_v0 }
 0x3e6   : > { %v1535_v29 = vpop.eup %1534 }
 0x3e7   : > { %v891_v30 = vmul.f32 %v1535_v29, %v1527_v6 }
 0x3e9   : > { %v892_v31 = vpack.c.bf16 %v891_v30, %v891_v30 }
 0x3eb   : > { %1302 = vst.msk [vmem:[%s2057_s29 + $0xc] sm:$0xf] %vm555_vm3, %v892_v31  ;;  %1393 = vmatmul.mubr.msk.bf16.vlgmr.msra.gmra.mxu0 %vm496_vm2, %v892_v31 }
 0x474   : > { %v600_v32 = vpop.f32.mrf.mxu0 }
 0x476   : > { %v1358_v33 = vpop.f32.mrf.mxu0 }
 0x478   : > { %v603_v34 = vpop.f32.mrf.mxu0 }
 0x47a   : > { %v1359_v35 = vpop.f32.mrf.mxu0 }
 0x47c   : > { %v713_v36 = vpop.f32.mrf.mxu0 }
 0x47d   : > { %944 = vrot.lane.b32.xlu1 %v713_v36, %s1789_s2 }
 0x47e   : > { %v1370_v37 = vpop.f32.mrf.mxu0 }
 0x480   : > { %v716_v38 = vpop.f32.mrf.mxu0 }
 0x482   : > { %v1371_v39 = vpop.f32.mrf.mxu0 }
 0x4a1   : > { %v825_v42 = vpop.f32.mrf.mxu0 }
 0x4a2   : > { %948 = vrot.lane.b32.xlu0 %v825_v42, %s1790_s26 }
 0x4a3   : > { %v1382_v43 = vpop.f32.mrf.mxu0 }
 0x4a5   : > { %v828_v44 = vpop.f32.mrf.mxu0 }
 0x4a7   : > { %v1383_v45 = vpop.f32.mrf.mxu0 }
 0x4ab   : > { %v937_v46 = vpop.f32.mrf.mxu0 }
 0x4ac   : > { %952 = vrot.lane.b32.xlu1 %v937_v46, %s1791_s11 }
 0x4ad   : > { %v1394_v47 = vpop.f32.mrf.mxu0 }
 0x4af   : > { %v940_v48 = vpop.f32.mrf.mxu0 }
 0x4b1   : > { %v1395_v49 = vpop.f32.mrf.mxu0 }
 0x4ef   : > { %v945_v50 = vpop.permute.xlu1 %944 }
 0x4f0   : > { %v955_v0 = vsel %vm496_vm2, %v600_v32, %v945_v50 }
 0x514   : > { %v949_v51 = vpop.permute.xlu0 %948 }
 0x515   : > { %v957_v52 = vsel %vm956_vm5, %v955_v0, %v949_v51 }
 0x51e   : > { %v953_v53 = vpop.permute.xlu1 %952 }
 0x51f   : > { %v959_v54 = vsel %vm958_vm6, %v957_v52, %v953_v53 }
 0x520   : > { %v960_v55 = vpack.c.bf16 %v959_v54, %v959_v54 }
 0x522   : > { %1401 = vmatmul.mubr.msk.bf16.vlgmr.msra.gmra.mxu1 %vm440_vm0, %v960_v55 }
 0x5e2   : > { %v1020_v57 = vpop.f32.mrf.mxu1 }
 0x5e3   : > { %v1026_v58 = vadd.f32 %v1020_v57, %v966_v56 }
 0x5e4   : > { %v1402_v59 = vpop.f32.mrf.mxu1 }
 0x5e5   : > { %1027 = vst.msk [vmem:[#allocation2] sm:$0xff] %vm440_vm0, %v1026_v58 }
 0x5e6   : > { %v1023_v60 = vpop.f32.mrf.mxu1 }
 0x5e8   : > { %v1403_v61 = vpop.f32.mrf.mxu1 }
 0x5ec   : > { %v1031_v63 = vld [vmem:[#allocation2] sm:$0xff] }
 0x5ed   : > { %v1037_v1 = vadd.f32 %v1307_v62, %v1031_v63 }
 0x5ef   : > { %v1038_v2 = vmax.f32 %v1037_v1, 0.0 }
 0x5f1   : > { %v1039_v4 = vadd.f32 %v1038_v2, %v2003_v3 }
 0x5f3   : > { %v1040_v5 = vsel %vm440_vm0, %v1039_v4, 0.0 }
 0x5f4   : > { %1041 = vadd.xlane.f32.xlu0 %v1040_v5 }
 0x67d   : > { %v1042_v6 = vpop.xlane.xlu0 %1041 }
 0x67e   : > { %v1044_v7 = vmul.f32 0.03125, %v1042_v6 }
 0x680   : > { %v1045_v8 = vsub.f32 %v1039_v4, %v1044_v7 }
 0x682   : > { %v1046_v9 = vmul.f32 %v1045_v8, %v1045_v8 }
 0x684   : > { %v1047_v11 = vsel %vm440_vm0, %v1046_v9, 0.0 }
 0x685   : > { %1048 = vadd.xlane.f32.xlu1 %v1047_v11 }
 0x686   : > { %1659 = shalt.err (!%p1656_p1)
}
 0x687   : > { %s1660_s17 = scalar_lea.hbm %s2099_s15, 256  ;;  %s1664_s26 = scalar_lea.hbm %s2184_s7, 512 }
 0x688   : > { %p1661_p2 = scmp.ne.s32.totalorder %s2099_s15, %s1660_s17  ;;  %p1665_p13 = scmp.lt.s32.totalorder %s2099_s15, %s2184_s7 }
 0x689   : > { %p1666_p0 = scmp.lt.s32.totalorder %s1664_s26, %s1660_s17 }
 0x68a   : > { %p1662_p6 = pnand %p1661_p2, %p1926_p9 }
 0x68b   : > { %p1667_p12 = por %p1666_p0, %p1665_p13 }
 0x68c   : > { %p1663_p8 = pneg %p1662_p6 }
 0x68e   : > { %p1668_p4 = pnand %p1667_p12, %p1663_p8 }
 0x690   : > { %1671 = shalt.err (!%p1668_p4)
}
 0x691   : > { %s1793_s9 = smov 4   ;;  %v1308_v15 = vld [vmem:[%s2182_s5 + $0x1] ss:$0 sm:$0xff]  ;;  %v1309_v16 = vld [vmem:[%s2182_s5 + $0x2] ss:$0 sm:$0xff]  ;;  %s1312_s16 = sshll.u32 %s1760_s27, 7 }
 0x692   : > { %1417 = dma.vmem_to_hbm [thread:$0]  (%p1926_p9), %s2101_s19, 256, %s2099_s15, %s1073_s21, %s1786_s18, %s1786_s18, %s1793_s9  }
 0x693   : > { %s401_s13 = scalar_lea.vmem [#allocation11], %s1283_s4  ;;  %s1084_s21 = scalar_lea.hbm %s2183_s6, %s1312_s16 }
 0x694   : > { %s1086_s18 = sshll.u32 %s401_s13, 4  ;;  %s1068_s20 = scalar_lea.sflag [#allocation5], %s1971_s0  ;;  %s1087_s18 = int_to_ptr.vmem [resolvable:$true] %s1086_s18 }
 0x695   : > { %s1672_s17 = scalar_lea.vmem %s1087_s18, 128  ;;  %s1794_s29 = smov [#allocation11]  }
 0x696   : > { %p1673_p3 = scmp.ne.s32.totalorder %s1087_s18, %s1672_s17  ;;  %s1676_s27 = sshll.u32 %s1794_s29, 4  ;;  %s1677_s27 = int_to_ptr.vmem [resolvable:$false] %s1676_s27 }
 0x697   : > { %s1678_s4 = scalar_lea.vmem %s1677_s27, 256  ;;  %p1679_p5 = scmp.lt.s32.totalorder %s1087_s18, %s1677_s27 }
 0x698   : > { %p1674_p7 = pnand %p1673_p3, %p1926_p9  ;;  %p1680_p10 = scmp.lt.s32.totalorder %s1678_s4, %s1672_s17 }
 0x69a   : > { %p1675_p11 = pneg %p1674_p7  ;;  %p1681_p1 = por %p1680_p10, %p1679_p5 }
 0x69c   : > { %p1682_p2 = pnand %p1681_p1, %p1675_p11 }
 0x70e   : > { %v1049_v3 = vpop.xlane.xlu1 %1048 }
 0x70f   : > { %v1050_v12 = vmul.f32 0.03125, %v1049_v3 }
 0x711   : > { %v1051_v13 = vadd.f32 1e-05, %v1050_v12 }
 0x713   : > { %1536 = vrsqrt.f32 %v1051_v13 }
 0x720   : > { %v1537_v14 = vpop.eup %1536 }
 0x721   : > { %v1053_v10 = vmul.f32 %v1537_v14, %v1045_v8 }
 0x723   : > { %v1059_v17 = vmul.f32 %v1308_v15, %v1053_v10 }
 0x725   : > { %v1065_v18 = vadd.f32 %v1309_v16, %v1059_v17 }
 0x727   : > { %1066 = vst.msk [vmem:[%s401_s13] sm:$0xff] %vm440_vm0, %v1065_v18 }
 0x728   : > { %1685 = shalt.err (!%p1682_p2)
}
 0x729   : > { %s1686_s2 = scalar_lea.hbm %s1084_s21, 128  ;;  %s1690_s11 = scalar_lea.hbm %s2183_s6, 256 }
 0x72a   : > { %p1687_p6 = scmp.ne.s32.totalorder %s1084_s21, %s1686_s2  ;;  %p1691_p0 = scmp.lt.s32.totalorder %s1084_s21, %s2183_s6 }
 0x72b   : > { %p1692_p12 = scmp.lt.s32.totalorder %s1690_s11, %s1686_s2 }
 0x72c   : > { %p1688_p8 = pnand %p1687_p6, %p1926_p9 }
 0x72d   : > { %p1693_p4 = por %p1692_p12, %p1691_p0 }
 0x72e   : > { %p1689_p13 = pneg %p1688_p8 }
 0x730   : > { %p1694_p3 = pnand %p1693_p4, %p1689_p13 }
 0x732   : > { %1697 = shalt.err (!%p1694_p3)
}
 0x733   : > { %1416 = dma.vmem_to_hbm [thread:$0]  (%p1926_p9), %s1087_s18, 128, %s1084_s21, %s1068_s20  }
 0x734 PF: > { %s2211_s12 = sld [smem:[#allocation21_spill]]  ;;  %s1116_s22 = sand.u32 1, %s1748_s24  }
 0x735   : > { %p2212_p7 = scmp.ne.s32.totalorder %s2196_s10, 0  ;;  %s1117_s8 = scalar_lea.sflag [#allocation5], %s1116_s22 }
 0x73a   : > { %p2213_p11 = scmp.ge.s32.totalorder %s2211_s12, 2 }
 0x73c   : > { %p1435_p5 = pnand %p2213_p11, %p2212_p7 }
 0x73e   : > { %p1436_p10 = pneg %p1435_p5 }
 0x740   : > { %1739 = dma.done.wait (%p1436_p10), %s1117_s8, 128  }
 0x741   : > { %1741 = vsyncadd (%p1436_p10), %s1117_s8, 4294967168  ;;  %s1126_s23 = scalar_lea.sflag [#allocation13], %s1116_s22 }
 0x742   : > { %1743 = dma.done.wait (%p1436_p10), %s1126_s23, 256  }
 0x743   : > { %1745 = vsyncadd (%p1436_p10), %s1126_s23, 4294967040  ;;  %s31_s29 = sadd.s32 1, %s2211_s12   ;;  %s2214_s14 = sld [smem:[#allocation20_spill]] }
 0x744   : > { %p28_p1 = scmp.ge.s32.totalorder %s31_s29, 4   ;;  %s2215_s26 = sld [smem:[#allocation23_spill]] }
 0x745   : > { %s2216_s16 = sld [smem:[#allocation22_spill]]  ;;  %s2217_s24 = smov %s1752_s25 }
 0x746   : > { %s2219_s27 = smov %s1764_s28 }
 0x747   :  { %30 = sbr.rel (!%p28_p1) target bundleno = 15 (0xf), region = 143 }
 0x749   : > { %s2218_s25 = smov %s2214_s14 }
 0x74b   : > { %s2220_s28 = smov %s2216_s16 }
 0x74c   :  { %1131 = vsyncpa [#allocation4], 1 }
 0x74d   :  { %1133 = vsyncpa [#allocation4 + $0x1], 1 }
 0x74e   :  { %1134 = vsyncpa [#allocation7], 1 }
 0x74f   :  { %1136 = vsyncpa [#allocation7 + $0x1], 1 }
 0x750   :  { %1137 = vsyncpa [#allocation10], 1 }
 0x751   :  { %1138 = vsyncpa [#allocation5], 1 }
 0x752   :  { %1140 = vsyncpa [#allocation5 + $0x1], 1 }
 0x753   :  { %1141 = vsyncpa [#allocation13], 1 }
 0x754   :  { %1143 = vsyncpa [#allocation13 + $0x1], 1 }

</bundles_post_ra>
